<compile_context>
chip_gen: v7x
topology: tpu7x:2x2x1
jax: 0.10.0
libtpu: 0.0.40
codegen_flags: <defaults>
</compile_context>

<pallas_src>
import numpy as np
import jax
import jax.numpy as jnp
from jax.experimental import pallas as pl
from jax.experimental.pallas import tpu as pltpu

# ---------------------------------------------------------------------------
# Model hyper-parameters (small, consistent with the module)
# ---------------------------------------------------------------------------
B = 2               # batch
S = 8               # sequence length
H = 32              # hidden_size
NUM_HEADS = 4
D_K = H // NUM_HEADS
FF = 4 * H
LN_EPS = 1e-5

R = B * S           # 16 flattened (batch, seq) rows
C = NUM_HEADS * R   # 64 score columns, laid out head-major: m = head * R + key_row


def _layernorm(x, gamma, beta):
    mu = jnp.mean(x, axis=-1, keepdims=True)
    var = jnp.mean((x - mu) ** 2, axis=-1, keepdims=True)
    return (x - mu) * jax.lax.rsqrt(var + LN_EPS) * gamma + beta


# ---------------------------------------------------------------------------
# Pallas kernel: full encoder layer in one grid-less invocation
# ---------------------------------------------------------------------------
def encoder_layer_kernel(
    x_ref,                                   # (R, H)
    wqkv_ref, bqkv_ref,                      # (H, 3H), (1, 3H)  (1/sqrt(d_k) folded into Q)
    wo_ref, bo_ref,                          # output projection
    g1_ref, be1_ref,                         # LayerNorm 1
    w1_ref, b1_ref, w2_ref, b2_ref,          # feed-forward
    g2_ref, be2_ref,                         # LayerNorm 2
    erep_ref,                                # (C, R)  replication matrix: erep[m, r] = (m % R == r)
    kvmask_ref,                              # (C, 2H) block-diag head selector for [K | V] halves
    amask_ref,                               # (R, C)  additive mask: -1e9 at cross-batch keys
    bsum_ref,                                # (C, C)  1 within same head block (softmax denom)
    o_ref,                                   # (R, H)
):
    x = x_ref[...]                           # f32 (16, 32)

    # ---- fused QKV projection: one MXU push with N = 3H ----
    qkv = jnp.dot(x, wqkv_ref[...], preferred_element_type=jnp.float32) + bqkv_ref[...]
    q = qkv[:, :H]                           # already scaled by 1/sqrt(d_k)
    kv = qkv[:, H:]                          # (R, 2H) = [K | V]

    # ---- per-head K/V expansion via one MXU push (no XLU transpose, no concats) ----
    # kv_exp[m, f] = kvmask[m, f] * kv[m % R, f]; row m holds only head (m // R) features.
    kv_exp = jnp.dot(erep_ref[...], kv, preferred_element_type=jnp.float32) * kvmask_ref[...]
    k_exp = kv_exp[:, :H]                    # (C, H)
    v_exp = kv_exp[:, H:]                    # (C, H)

    # ---- batched multi-head attention (all heads & batch elements at once) ----
    # s[r, m] = per-head score of query row r vs. key row (m % R) for head (m // R).
    s = jax.lax.dot_general(q, k_exp, (((1,), (1,)), ((), ())),
                            preferred_element_type=jnp.float32) + amask_ref[...]   # (16, 64)
    # No row-max shift: scores are small at these magnitudes and the -1e9 masked
    # entries underflow exp() to exactly 0 (matches reference softmax to fp32 noise).
    e = jnp.exp(s)
    denom = jnp.dot(e, bsum_ref[...], preferred_element_type=jnp.float32)          # per-head sums
    inv = pl.reciprocal(denom, approx=True)      # EUP slot, ~free alongside VPU work
    inv = inv * (2.0 - denom * inv)              # one Newton step -> full f32 accuracy
    probs = e * inv                              # attention dropout(p=0.1): identity in eval
    attn = jnp.dot(probs, v_exp, preferred_element_type=jnp.float32)               # (16, 32)

    # ---- output projection ----
    attn = jnp.dot(attn, wo_ref[...], preferred_element_type=jnp.float32) + bo_ref[...]

    # ---- residual + LayerNorm 1 (dropout identity) ----
    x1 = _layernorm(x + attn, g1_ref[...], be1_ref[...])

    # ---- feed-forward: Linear -> ReLU -> Linear (FF = 128 is lane-dense) ----
    h1 = jnp.dot(x1, w1_ref[...], preferred_element_type=jnp.float32) + b1_ref[...]
    h1 = jnp.maximum(h1, 0.0)
    h2 = jnp.dot(h1, w2_ref[...], preferred_element_type=jnp.float32) + b2_ref[...]

    # ---- residual + LayerNorm 2 ----
    o_ref[...] = _layernorm(x1 + h2, g2_ref[...], be2_ref[...]).astype(o_ref.dtype)


# ---------------------------------------------------------------------------
# Host-side constants (built once) + parameter preparation (hoisted)
# ---------------------------------------------------------------------------
def _attention_constants():
    col = np.arange(C)                 # score-column index m = head * R + key_row
    feat = np.arange(H)                # hidden-feature index
    row = np.arange(R)                 # query-row index
    head_col = col // R                # head of each score column
    head_feat = feat // D_K            # head of each hidden feature
    batch_col = (col % R) // S         # batch of each score column's key row
    batch_row = row // S               # batch of each query row

    erep = (col[:, None] % R == row[None, :]).astype(np.float32)              # (C, R)
    vmask = (head_col[:, None] == head_feat[None, :]).astype(np.float32)      # (C, H)
    kvmask = np.concatenate([vmask, vmask], axis=1)                           # (C, 2H)
    amask = np.where(batch_row[:, None] == batch_col[None, :],
                     0.0, -1e9).astype(np.float32)                            # (R, C)
    bsum = (head_col[:, None] == head_col[None, :]).astype(np.float32)        # (C, C)
    return (jnp.asarray(erep), jnp.asarray(kvmask),
            jnp.asarray(amask), jnp.asarray(bsum))


def prepare_params(params):
    """One-time host work: fused/scaled QKV weights + constant attention masks."""
    scale = 1.0 / float(np.sqrt(D_K))
    wqkv = jnp.concatenate([params["wq"] * scale, params["wk"], params["wv"]], axis=1)  # (H, 3H)
    bqkv = jnp.concatenate([params["bq"] * scale, params["bk"], params["bv"]], axis=1)  # (1, 3H)
    erep, kvmask, amask, bsum = _attention_constants()
    return dict(
        wqkv=wqkv, bqkv=bqkv,
        wo=params["wo"], bo=params["bo"],
        g1=params["g1"], be1=params["be1"],
        w1=params["w1"], b1=params["b1"], w2=params["w2"], b2=params["b2"],
        g2=params["g2"], be2=params["be2"],
        erep=erep, kvmask=kvmask, amask=amask, bsum=bsum,
    )


# ---------------------------------------------------------------------------
# Jitted wrapper (no per-call host work)
# ---------------------------------------------------------------------------
@jax.jit
def encoder_layer(x, prep):
    """x: (B, S, H) float32 -> (B, S, H) float32."""
    args = (
        x.reshape(R, H),
        prep["wqkv"], prep["bqkv"],
        prep["wo"], prep["bo"],
        prep["g1"], prep["be1"],
        prep["w1"], prep["b1"], prep["w2"], prep["b2"],
        prep["g2"], prep["be2"],
        prep["erep"], prep["kvmask"], prep["amask"], prep["bsum"],
    )
    out2d = pl.pallas_call(
        encoder_layer_kernel,
        out_shape=jax.ShapeDtypeStruct((R, H), jnp.float32),
        in_specs=[pl.BlockSpec(memory_space=pltpu.MemorySpace.VMEM) for _ in args],
        out_specs=pl.BlockSpec(memory_space=pltpu.MemorySpace.VMEM),
    )(*args)
    return out2d.reshape(B, S, H)


# ---------------------------------------------------------------------------
# Deterministic parameter init + pure-JAX reference
# ---------------------------------------------------------------------------
def init_params(key):
    ks = jax.random.split(key, 12)
    sc = 0.05
    return {
        "wq": sc * jax.random.normal(ks[0], (H, H), jnp.float32),
        "bq": sc * jax.random.normal(ks[1], (1, H), jnp.float32),
        "wk": sc * jax.random.normal(ks[2], (H, H), jnp.float32),
        "bk": sc * jax.random.normal(ks[3], (1, H), jnp.float32),
        "wv": sc * jax.random.normal(ks[4], (H, H), jnp.float32),
        "bv": sc * jax.random.normal(ks[5], (1, H), jnp.float32),
        "wo": sc * jax.random.normal(ks[6], (H, H), jnp.float32),
        "bo": sc * jax.random.normal(ks[7], (1, H), jnp.float32),
        "g1": jnp.ones((1, H), jnp.float32),
        "be1": jnp.zeros((1, H), jnp.float32),
        "w1": sc * jax.random.normal(ks[8], (H, FF), jnp.float32),
        "b1": sc * jax.random.normal(ks[9], (1, FF), jnp.float32),
        "w2": sc * jax.random.normal(ks[10], (FF, H), jnp.float32),
        "b2": sc * jax.random.normal(ks[11], (1, H), jnp.float32),
        "g2": jnp.ones((1, H), jnp.float32),
        "be2": jnp.zeros((1, H), jnp.float32),
    }


def reference(x, p):
    def ln(y, g, b):
        mu = jnp.mean(y, axis=-1, keepdims=True)
        var = jnp.mean((y - mu) ** 2, axis=-1, keepdims=True)
        return (y - mu) / jnp.sqrt(var + LN_EPS) * g + b

    q = x @ p["wq"] + p["bq"]
    k = x @ p["wk"] + p["bk"]
    v = x @ p["wv"] + p["bv"]
    q = q.reshape(B, S, NUM_HEADS, D_K).transpose(0, 2, 1, 3)
    k = k.reshape(B, S, NUM_HEADS, D_K).transpose(0, 2, 1, 3)
    v = v.reshape(B, S, NUM_HEADS, D_K).transpose(0, 2, 1, 3)
    scores = jnp.einsum("bhqd,bhkd->bhqk", q, k) / jnp.sqrt(jnp.float32(D_K))
    probs = jax.nn.softmax(scores, axis=-1)
    attn = jnp.einsum("bhqk,bhkd->bhqd", probs, v)
    attn = attn.transpose(0, 2, 1, 3).reshape(B, S, H)
    attn = attn @ p["wo"] + p["bo"]
    x1 = ln(x + attn, p["g1"], p["be1"])
    h = jnp.maximum(x1 @ p["w1"] + p["b1"], 0.0)
    h = h @ p["w2"] + p["b2"]
    return ln(x1 + h, p["g2"], p["be2"])


if __name__ == "__main__":
    key = jax.random.PRNGKey(0)
    kx, kp = jax.random.split(key)
    x = jax.random.normal(kx, (B, S, H), jnp.float32)
    params = init_params(kp)
    prep = prepare_params(params)          # hoisted: done once, not per call

    out = jax.block_until_ready(encoder_layer(x, prep))
    ref = reference(x, params)

    assert out.shape == (B, S, H)
    assert jnp.allclose(out, ref, atol=1e-4, rtol=1e-4), "mismatch vs reference"
    print("KERNEL_OK")
</pallas_src>

<mosaic_0001>
module attributes {stable_mosaic.version = 11 : i64} {
  func.func @encoder_layer_kernel(%arg0: memref<16x32xf32, #tpu.memory_space<vmem>>, %arg1: memref<32x96xf32, #tpu.memory_space<vmem>>, %arg2: memref<1x96xf32, #tpu.memory_space<vmem>>, %arg3: memref<32x32xf32, #tpu.memory_space<vmem>>, %arg4: memref<1x32xf32, #tpu.memory_space<vmem>>, %arg5: memref<1x32xf32, #tpu.memory_space<vmem>>, %arg6: memref<1x32xf32, #tpu.memory_space<vmem>>, %arg7: memref<32x128xf32, #tpu.memory_space<vmem>>, %arg8: memref<1x128xf32, #tpu.memory_space<vmem>>, %arg9: memref<128x32xf32, #tpu.memory_space<vmem>>, %arg10: memref<1x32xf32, #tpu.memory_space<vmem>>, %arg11: memref<1x32xf32, #tpu.memory_space<vmem>>, %arg12: memref<1x32xf32, #tpu.memory_space<vmem>>, %arg13: memref<64x16xf32, #tpu.memory_space<vmem>>, %arg14: memref<64x64xf32, #tpu.memory_space<vmem>>, %arg15: memref<16x64xf32, #tpu.memory_space<vmem>>, %arg16: memref<64x64xf32, #tpu.memory_space<vmem>>, %arg17: memref<16x32xf32, #tpu.memory_space<vmem>>) attributes {dimension_semantics = [], scalar_prefetch = 0 : i64, scratch_operands = 0 : i64, tpu.core_type = #tpu.core_type<tc>} {
    %c0 = arith.constant 0 : index
    %c0_0 = arith.constant 0 : index
    %0 = vector.load %arg0[%c0, %c0_0] : memref<16x32xf32, #tpu.memory_space<vmem>>, vector<16x32xf32>
    %c0_1 = arith.constant 0 : index
    %c0_2 = arith.constant 0 : index
    %1 = vector.load %arg1[%c0_1, %c0_2] : memref<32x96xf32, #tpu.memory_space<vmem>>, vector<32x96xf32>
    %cst = arith.constant dense<0.000000e+00> : vector<16x96xf32>
    %2 = tpu.matmul %0, %1, %cst {dimension_numbers = #tpu.dot_dimension_numbers<[1], [0], [0], [1], [0, 0, 1, 1], [], []>} : vector<16x32xf32>, vector<32x96xf32>, vector<16x96xf32> -> vector<16x96xf32>
    %c0_3 = arith.constant 0 : index
    %c0_4 = arith.constant 0 : index
    %3 = vector.load %arg2[%c0_3, %c0_4] : memref<1x96xf32, #tpu.memory_space<vmem>>, vector<1x96xf32>
    %4 = vector.broadcast %3 : vector<1x96xf32> to vector<16x96xf32>
    %5 = arith.addf %2, %4 : vector<16x96xf32>
    %6 = vector.extract_strided_slice %5 {offsets = [0, 0], sizes = [16, 32], strides = [1, 1]} : vector<16x96xf32> to vector<16x32xf32>
    %7 = vector.extract_strided_slice %5 {offsets = [0, 32], sizes = [16, 64], strides = [1, 1]} : vector<16x96xf32> to vector<16x64xf32>
    %c0_5 = arith.constant 0 : index
    %c0_6 = arith.constant 0 : index
    %8 = vector.load %arg13[%c0_5, %c0_6] : memref<64x16xf32, #tpu.memory_space<vmem>>, vector<64x16xf32>
    %cst_7 = arith.constant dense<0.000000e+00> : vector<64x64xf32>
    %9 = tpu.matmul %8, %7, %cst_7 {dimension_numbers = #tpu.dot_dimension_numbers<[1], [0], [0], [1], [0, 0, 1, 1], [], []>} : vector<64x16xf32>, vector<16x64xf32>, vector<64x64xf32> -> vector<64x64xf32>
    %c0_8 = arith.constant 0 : index
    %c0_9 = arith.constant 0 : index
    %10 = vector.load %arg14[%c0_8, %c0_9] : memref<64x64xf32, #tpu.memory_space<vmem>>, vector<64x64xf32>
    %11 = arith.mulf %9, %10 : vector<64x64xf32>
    %12 = vector.extract_strided_slice %11 {offsets = [0, 0], sizes = [64, 32], strides = [1, 1]} : vector<64x64xf32> to vector<64x32xf32>
    %13 = vector.extract_strided_slice %11 {offsets = [0, 32], sizes = [64, 32], strides = [1, 1]} : vector<64x64xf32> to vector<64x32xf32>
    %cst_10 = arith.constant dense<0.000000e+00> : vector<16x64xf32>
    %14 = tpu.matmul %6, %12, %cst_10 {dimension_numbers = #tpu.dot_dimension_numbers<[1], [1], [0], [0], [0, 0, 1, 0], [], []>} : vector<16x32xf32>, vector<64x32xf32>, vector<16x64xf32> -> vector<16x64xf32>
    %c0_11 = arith.constant 0 : index
    %c0_12 = arith.constant 0 : index
    %15 = vector.load %arg15[%c0_11, %c0_12] : memref<16x64xf32, #tpu.memory_space<vmem>>, vector<16x64xf32>
    %16 = arith.addf %14, %15 : vector<16x64xf32>
    %17 = math.exp %16 : vector<16x64xf32>
    %c0_13 = arith.constant 0 : index
    %c0_14 = arith.constant 0 : index
    %18 = vector.load %arg16[%c0_13, %c0_14] : memref<64x64xf32, #tpu.memory_space<vmem>>, vector<64x64xf32>
    %cst_15 = arith.constant dense<0.000000e+00> : vector<16x64xf32>
    %19 = tpu.matmul %17, %18, %cst_15 {dimension_numbers = #tpu.dot_dimension_numbers<[1], [0], [0], [1], [0, 0, 1, 1], [], []>} : vector<16x64xf32>, vector<64x64xf32>, vector<16x64xf32> -> vector<16x64xf32>
    %20 = tpu.reciprocal %19 {approx = true} : vector<16x64xf32> -> vector<16x64xf32>
    %21 = arith.mulf %19, %20 : vector<16x64xf32>
    %cst_16 = arith.constant 2.000000e+00 : f32
    %22 = vector.broadcast %cst_16 : f32 to vector<16x64xf32>
    %23 = arith.subf %22, %21 : vector<16x64xf32>
    %24 = arith.mulf %20, %23 : vector<16x64xf32>
    %25 = arith.mulf %17, %24 : vector<16x64xf32>
    %cst_17 = arith.constant dense<0.000000e+00> : vector<16x32xf32>
    %26 = tpu.matmul %25, %13, %cst_17 {dimension_numbers = #tpu.dot_dimension_numbers<[1], [0], [0], [1], [0, 0, 1, 1], [], []>} : vector<16x64xf32>, vector<64x32xf32>, vector<16x32xf32> -> vector<16x32xf32>
    %c0_18 = arith.constant 0 : index
    %c0_19 = arith.constant 0 : index
    %27 = vector.load %arg3[%c0_18, %c0_19] : memref<32x32xf32, #tpu.memory_space<vmem>>, vector<32x32xf32>
    %cst_20 = arith.constant dense<0.000000e+00> : vector<16x32xf32>
    %28 = tpu.matmul %26, %27, %cst_20 {dimension_numbers = #tpu.dot_dimension_numbers<[1], [0], [0], [1], [0, 0, 1, 1], [], []>} : vector<16x32xf32>, vector<32x32xf32>, vector<16x32xf32> -> vector<16x32xf32>
    %c0_21 = arith.constant 0 : index
    %c0_22 = arith.constant 0 : index
    %29 = vector.load %arg4[%c0_21, %c0_22] : memref<1x32xf32, #tpu.memory_space<vmem>>, vector<1x32xf32>
    %30 = vector.broadcast %29 : vector<1x32xf32> to vector<16x32xf32>
    %31 = arith.addf %28, %30 : vector<16x32xf32>
    %32 = arith.addf %0, %31 : vector<16x32xf32>
    %c0_23 = arith.constant 0 : index
    %c0_24 = arith.constant 0 : index
    %33 = vector.load %arg5[%c0_23, %c0_24] : memref<1x32xf32, #tpu.memory_space<vmem>>, vector<1x32xf32>
    %c0_25 = arith.constant 0 : index
    %c0_26 = arith.constant 0 : index
    %34 = vector.load %arg6[%c0_25, %c0_26] : memref<1x32xf32, #tpu.memory_space<vmem>>, vector<1x32xf32>
    %cst_27 = arith.constant dense<0.000000e+00> : vector<16xf32>
    %35 = vector.multi_reduction <add>, %32, %cst_27 [1] : vector<16x32xf32> to vector<16xf32>
    %36 = vector.shape_cast %35 : vector<16xf32> to vector<16x1xf32>
    %cst_28 = arith.constant 3.200000e+01 : f32
    %37 = vector.broadcast %cst_28 : f32 to vector<16x1xf32>
    %38 = arith.divf %36, %37 : vector<16x1xf32>
    %39 = vector.broadcast %38 : vector<16x1xf32> to vector<16x32xf32>
    %40 = arith.subf %32, %39 : vector<16x32xf32>
    %41 = arith.mulf %40, %40 : vector<16x32xf32>
    %cst_29 = arith.constant dense<0.000000e+00> : vector<16xf32>
    %42 = vector.multi_reduction <add>, %41, %cst_29 [1] : vector<16x32xf32> to vector<16xf32>
    %43 = vector.shape_cast %42 : vector<16xf32> to vector<16x1xf32>
    %cst_30 = arith.constant 3.200000e+01 : f32
    %44 = vector.broadcast %cst_30 : f32 to vector<16x1xf32>
    %45 = arith.divf %43, %44 : vector<16x1xf32>
    %46 = vector.broadcast %38 : vector<16x1xf32> to vector<16x32xf32>
    %47 = arith.subf %32, %46 : vector<16x32xf32>
    %cst_31 = arith.constant 9.99999974E-6 : f32
    %48 = vector.broadcast %cst_31 : f32 to vector<16x1xf32>
    %49 = arith.addf %45, %48 : vector<16x1xf32>
    %50 = math.rsqrt %49 : vector<16x1xf32>
    %51 = vector.broadcast %50 : vector<16x1xf32> to vector<16x32xf32>
    %52 = arith.mulf %47, %51 : vector<16x32xf32>
    %53 = vector.broadcast %33 : vector<1x32xf32> to vector<16x32xf32>
    %54 = arith.mulf %52, %53 : vector<16x32xf32>
    %55 = vector.broadcast %34 : vector<1x32xf32> to vector<16x32xf32>
    %56 = arith.addf %54, %55 : vector<16x32xf32>
    %c0_32 = arith.constant 0 : index
    %c0_33 = arith.constant 0 : index
    %57 = vector.load %arg7[%c0_32, %c0_33] : memref<32x128xf32, #tpu.memory_space<vmem>>, vector<32x128xf32>
    %cst_34 = arith.constant dense<0.000000e+00> : vector<16x128xf32>
    %58 = tpu.matmul %56, %57, %cst_34 {dimension_numbers = #tpu.dot_dimension_numbers<[1], [0], [0], [1], [0, 0, 1, 1], [], []>} : vector<16x32xf32>, vector<32x128xf32>, vector<16x128xf32> -> vector<16x128xf32>
    %c0_35 = arith.constant 0 : index
    %c0_36 = arith.constant 0 : index
    %59 = vector.load %arg8[%c0_35, %c0_36] : memref<1x128xf32, #tpu.memory_space<vmem>>, vector<1x128xf32>
    %60 = vector.broadcast %59 : vector<1x128xf32> to vector<16x128xf32>
    %61 = arith.addf %58, %60 : vector<16x128xf32>
    %cst_37 = arith.constant 0.000000e+00 : f32
    %62 = vector.broadcast %cst_37 : f32 to vector<16x128xf32>
    %63 = arith.maximumf %61, %62 : vector<16x128xf32>
    %c0_38 = arith.constant 0 : index
    %c0_39 = arith.constant 0 : index
    %64 = vector.load %arg9[%c0_38, %c0_39] : memref<128x32xf32, #tpu.memory_space<vmem>>, vector<128x32xf32>
    %cst_40 = arith.constant dense<0.000000e+00> : vector<16x32xf32>
    %65 = tpu.matmul %63, %64, %cst_40 {dimension_numbers = #tpu.dot_dimension_numbers<[1], [0], [0], [1], [0, 0, 1, 1], [], []>} : vector<16x128xf32>, vector<128x32xf32>, vector<16x32xf32> -> vector<16x32xf32>
    %c0_41 = arith.constant 0 : index
    %c0_42 = arith.constant 0 : index
    %66 = vector.load %arg10[%c0_41, %c0_42] : memref<1x32xf32, #tpu.memory_space<vmem>>, vector<1x32xf32>
    %67 = vector.broadcast %66 : vector<1x32xf32> to vector<16x32xf32>
    %68 = arith.addf %65, %67 : vector<16x32xf32>
    %69 = arith.addf %56, %68 : vector<16x32xf32>
    %c0_43 = arith.constant 0 : index
    %c0_44 = arith.constant 0 : index
    %70 = vector.load %arg11[%c0_43, %c0_44] : memref<1x32xf32, #tpu.memory_space<vmem>>, vector<1x32xf32>
    %c0_45 = arith.constant 0 : index
    %c0_46 = arith.constant 0 : index
    %71 = vector.load %arg12[%c0_45, %c0_46] : memref<1x32xf32, #tpu.memory_space<vmem>>, vector<1x32xf32>
    %cst_47 = arith.constant dense<0.000000e+00> : vector<16xf32>
    %72 = vector.multi_reduction <add>, %69, %cst_47 [1] : vector<16x32xf32> to vector<16xf32>
    %73 = vector.shape_cast %72 : vector<16xf32> to vector<16x1xf32>
    %cst_48 = arith.constant 3.200000e+01 : f32
    %74 = vector.broadcast %cst_48 : f32 to vector<16x1xf32>
    %75 = arith.divf %73, %74 : vector<16x1xf32>
    %76 = vector.broadcast %75 : vector<16x1xf32> to vector<16x32xf32>
    %77 = arith.subf %69, %76 : vector<16x32xf32>
    %78 = arith.mulf %77, %77 : vector<16x32xf32>
    %cst_49 = arith.constant dense<0.000000e+00> : vector<16xf32>
    %79 = vector.multi_reduction <add>, %78, %cst_49 [1] : vector<16x32xf32> to vector<16xf32>
    %80 = vector.shape_cast %79 : vector<16xf32> to vector<16x1xf32>
    %cst_50 = arith.constant 3.200000e+01 : f32
    %81 = vector.broadcast %cst_50 : f32 to vector<16x1xf32>
    %82 = arith.divf %80, %81 : vector<16x1xf32>
    %83 = vector.broadcast %75 : vector<16x1xf32> to vector<16x32xf32>
    %84 = arith.subf %69, %83 : vector<16x32xf32>
    %cst_51 = arith.constant 9.99999974E-6 : f32
    %85 = vector.broadcast %cst_51 : f32 to vector<16x1xf32>
    %86 = arith.addf %82, %85 : vector<16x1xf32>
    %87 = math.rsqrt %86 : vector<16x1xf32>
    %88 = vector.broadcast %87 : vector<16x1xf32> to vector<16x32xf32>
    %89 = arith.mulf %84, %88 : vector<16x32xf32>
    %90 = vector.broadcast %70 : vector<1x32xf32> to vector<16x32xf32>
    %91 = arith.mulf %89, %90 : vector<16x32xf32>
    %92 = vector.broadcast %71 : vector<1x32xf32> to vector<16x32xf32>
    %93 = arith.addf %91, %92 : vector<16x32xf32>
    %c0_52 = arith.constant 0 : index
    %c0_53 = arith.constant 0 : index
    %94 = vector.load %arg17[%c0_52, %c0_53] : memref<16x32xf32, #tpu.memory_space<vmem>>, vector<16x32xf32>
    tpu.vector_store %arg17[%c0_52, %c0_53], %93 {strides = array<i32>} : memref<16x32xf32, #tpu.memory_space<vmem>>, vector<16x32xf32>,
    return
  }
}

</mosaic_0001>

<bundles_post_ra>
// kernel: encoder_layer.1
= control target key start
LH: loop header
LB: loop body
LE: loop exit
PB: predicated region body
PF: predicated region fallthrough
CT: control target
= control target key end

     0   :  { %s2125_s0 = inlined_call_operand.hbm [shape: f32[16,32], index: 0, kind: input, shape index: {}]   ;;  %s2126_s1 = inlined_call_operand.vmem [shape: f32[32,96], index: 1, kind: input, shape index: {}]   ;;  %s2127_s2 = inlined_call_operand.vmem [shape: f32[1,96], index: 2, kind: input, shape index: {}]   ;;  %s2128_s3 = inlined_call_operand.vmem [shape: f32[32,32], index: 3, kind: input, shape index: {}]   ;;  %s2129_s4 = inlined_call_operand.vmem [shape: f32[1,32], index: 4, kind: input, shape index: {}]   ;;  %s2130_s5 = inlined_call_operand.vmem [shape: f32[1,32], index: 5, kind: input, shape index: {}]   ;;  %s2131_s6 = inlined_call_operand.hbm [shape: f32[1,32], index: 6, kind: input, shape index: {}]   ;;  %s2132_s7 = inlined_call_operand.vmem [shape: f32[32,128], index: 7, kind: input, shape index: {}]   ;;  %s2133_s8 = inlined_call_operand.hbm [shape: f32[1,128], index: 8, kind: input, shape index: {}]   ;;  %s2134_s9 = inlined_call_operand.vmem [shape: f32[128,32], index: 9, kind: input, shape index: {}]   ;;  %s2135_s10 = inlined_call_operand.hbm [shape: f32[1,32], index: 10, kind: input, shape index: {}]   ;;  %s2136_s11 = inlined_call_operand.vmem [shape: f32[1,32], index: 11, kind: input, shape index: {}]   ;;  %s2137_s12 = inlined_call_operand.hbm [shape: f32[1,32], index: 12, kind: input, shape index: {}]   ;;  %s2138_s13 = inlined_call_operand.vmem [shape: f32[64,16], index: 13, kind: input, shape index: {}]   ;;  %s2139_s14 = inlined_call_operand.vmem [shape: f32[64,64], index: 14, kind: input, shape index: {}]   ;;  %s2140_s15 = inlined_call_operand.hbm [shape: f32[16,64], index: 15, kind: input, shape index: {}]   ;;  %s2141_s16 = inlined_call_operand.vmem [shape: f32[64,64], index: 16, kind: input, shape index: {}]   ;;  %s2142_s17 = inlined_call_operand.hbm [shape: f32[16,32], index: 17, kind: output, shape index: {}]  }
   0x1   :  { %2145 = sst [smem:[#allocation19_spill]] %s2125_s0 }
   0x2   :  { %2146 = sst [smem:[#allocation20_spill]] %s2126_s1 }
   0x3   :  { %22 = vsyncpa [#allocation3], 0 }
   0x4   :  { %23 = vsyncpa [#allocation6], 0 }
   0x5   :  { %24 = vsyncpa [#allocation9], 0 }
   0x6   :  { %25 = vsyncpa [#allocation12], 0 }
   0x7   :  { %26 = vsyncpa [#allocation4], 0  ;;  %s1685_s24 = smov [#allocation5]   ;;  %s1686_s26 = smov [#allocation8]  }
   0x8   :  { %s55_s25 = sshll.u32 %s1685_s24, 4  ;;  %s79_s27 = sshll.u32 %s1686_s26, 4  ;;  %s56_s25 = int_to_ptr.vmem [resolvable:$true] %s55_s25  ;;  %s80_s27 = int_to_ptr.vmem [resolvable:$true] %s79_s27 }
   0x9   :  { %s1521_s0 = scalar_lea.hbm %s2131_s6, 16 }
   0xa   :  { %p1522_p0 = scmp.ne.s32.totalorder %s2131_s6, %s1521_s0  ;;  %p1525_p1 = scmp.lt.u32.totalorder %s1521_s0, %s2131_s6 }
   0xc   :  { %p1527_p2 = pnand %p1525_p1, %p1522_p0 }
   0xe   :  { %1530 = shalt.err (!%p1527_p2)
}
   0xf   :  { %s1531_s20 = scalar_lea.vmem %s56_s25, 16  ;;  %s1535_s21 = scalar_lea.vmem %s56_s25, 32 }
  0x10   :  { %p1532_p3 = scmp.ne.s32.totalorder %s56_s25, %s1531_s20  ;;  %p1536_p4 = scmp.lt.s32.totalorder %s56_s25, %s56_s25 }
  0x11   :  { %p1537_p5 = scmp.lt.s32.totalorder %s1535_s21, %s1531_s20 }
  0x13   :  { %p1538_p6 = por %p1537_p5, %p1536_p4 }
  0x15   :  { %p1539_p7 = pnand %p1538_p6, %p1532_p3 }
  0x17   :  { %1542 = shalt.err (!%p1539_p7)
}
  0x18   :  { %58 = dma.hbm_to_vmem [thread:$0]  %s2131_s6, 16, %s56_s25, [#allocation6]  }
  0x19   :  { %s1543_s28 = scalar_lea.hbm %s2135_s10, 16 }
  0x1a   :  { %p1544_p8 = scmp.ne.s32.totalorder %s2135_s10, %s1543_s28  ;;  %p1547_p9 = scmp.lt.u32.totalorder %s1543_s28, %s2135_s10 }
  0x1c   :  { %p1549_p10 = pnand %p1547_p9, %p1544_p8 }
  0x1e   :  { %1552 = shalt.err (!%p1549_p10)
}
  0x1f   :  { %s1553_s19 = scalar_lea.vmem %s80_s27, 16  ;;  %s1557_s1 = scalar_lea.vmem %s80_s27, 32 }
  0x20   :  { %p1554_p11 = scmp.ne.s32.totalorder %s80_s27, %s1553_s19  ;;  %p1558_p12 = scmp.lt.s32.totalorder %s80_s27, %s80_s27 }
  0x21   :  { %p1559_p13 = scmp.lt.s32.totalorder %s1557_s1, %s1553_s19 }
  0x23   :  { %p1560_p0 = por %p1559_p13, %p1558_p12 }
  0x25   :  { %p1561_p1 = pnand %p1560_p0, %p1554_p11 }
  0x27   :  { %1564 = shalt.err (!%p1561_p1)
}
  0x28   :  { %82 = dma.hbm_to_vmem [thread:$0]  %s2135_s10, 16, %s80_s27, [#allocation9]  }
  0x29   :  { %s1687_s20 = smov [#allocation2]   ;;  %s2147_s24 = sld [smem:[#allocation19_spill]] }
  0x2a   :  { %s32_s21 = sshll.u32 %s1687_s20, 4  ;;  %s33_s21 = int_to_ptr.vmem [resolvable:$true] %s32_s21 }
  0x2f   :  { %s1565_s26 = scalar_lea.hbm %s2147_s24, 256 }
  0x30   :  { %p1566_p2 = scmp.ne.s32.totalorder %s2147_s24, %s1565_s26  ;;  %p1569_p3 = scmp.lt.u32.totalorder %s1565_s26, %s2147_s24 }
  0x32   :  { %p1571_p4 = pnand %p1569_p3, %p1566_p2 }
  0x34   :  { %1574 = shalt.err (!%p1571_p4)
}
  0x35   :  { %s1575_s18 = scalar_lea.vmem %s33_s21, 256  ;;  %p1580_p6 = scmp.lt.s32.totalorder %s33_s21, %s33_s21 }
  0x36   :  { %p1576_p5 = scmp.ne.s32.totalorder %s33_s21, %s1575_s18  ;;  %p1581_p7 = scmp.lt.s32.totalorder %s1575_s18, %s1575_s18 }
  0x38   :  { %p1582_p8 = por %p1581_p7, %p1580_p6 }
  0x3a   :  { %p1583_p9 = pnand %p1582_p8, %p1576_p5 }
  0x3c   :  { %1586 = shalt.err (!%p1583_p9)
}
  0x3d   :  { %s1688_s10 = smov 128   ;;  %s1689_s27 = smov 8  }
  0x3e   :  { %38 = dma.hbm_to_vmem [thread:$0]  %s2147_s24, 256, %s33_s21, [#allocation3], %s1688_s10, %s1688_s10, %s1689_s27  }
  0x3f   :  { %s1690_s6 = smov [#allocation7]   ;;  %s1691_s20 = smov [#allocation10]  }
  0x40   :  { %s67_s25 = sshll.u32 %s1690_s6, 4  ;;  %s91_s22 = sshll.u32 %s1691_s20, 4  ;;  %s68_s25 = int_to_ptr.vmem [resolvable:$true] %s67_s25  ;;  %s92_s22 = int_to_ptr.vmem [resolvable:$true] %s91_s22 }
  0x41   :  { %s1587_s28 = scalar_lea.hbm %s2133_s8, 16 }
  0x42   :  { %p1588_p10 = scmp.ne.s32.totalorder %s2133_s8, %s1587_s28  ;;  %p1591_p11 = scmp.lt.u32.totalorder %s1587_s28, %s2133_s8 }
  0x44   :  { %p1593_p12 = pnand %p1591_p11, %p1588_p10 }
  0x46   :  { %1596 = shalt.err (!%p1593_p12)
}
  0x47   :  { %s1597_s21 = scalar_lea.vmem %s68_s25, 16  ;;  %s1601_s24 = scalar_lea.vmem %s68_s25, 32 }
  0x48   :  { %p1598_p13 = scmp.ne.s32.totalorder %s68_s25, %s1597_s21  ;;  %p1602_p0 = scmp.lt.s32.totalorder %s68_s25, %s68_s25 }
  0x49   :  { %p1603_p1 = scmp.lt.s32.totalorder %s1601_s24, %s1597_s21 }
  0x4b   :  { %p1604_p2 = por %p1603_p1, %p1602_p0 }
  0x4d   :  { %p1605_p3 = pnand %p1604_p2, %p1598_p13 }
  0x4f   :  { %1608 = shalt.err (!%p1605_p3)
}
  0x50   :  { %70 = dma.hbm_to_vmem [thread:$0]  %s2133_s8, 16, %s68_s25, [#allocation6]  }
  0x51   :  { %s1609_s23 = scalar_lea.hbm %s2137_s12, 16 }
  0x52   :  { %p1610_p4 = scmp.ne.s32.totalorder %s2137_s12, %s1609_s23  ;;  %p1613_p5 = scmp.lt.u32.totalorder %s1609_s23, %s2137_s12 }
  0x54   :  { %p1615_p6 = pnand %p1613_p5, %p1610_p4 }
  0x56   :  { %1618 = shalt.err (!%p1615_p6)
}
  0x57   :  { %s1619_s30 = scalar_lea.vmem %s92_s22, 16  ;;  %s1623_s18 = scalar_lea.vmem %s92_s22, 32 }
  0x58   :  { %p1620_p7 = scmp.ne.s32.totalorder %s92_s22, %s1619_s30  ;;  %p1624_p8 = scmp.lt.s32.totalorder %s92_s22, %s92_s22 }
  0x59   :  { %p1625_p9 = scmp.lt.s32.totalorder %s1623_s18, %s1619_s30 }
  0x5b   :  { %p1626_p10 = por %p1625_p9, %p1624_p8 }
  0x5d   :  { %p1627_p11 = pnand %p1626_p10, %p1620_p7 }
  0x5f   :  { %1630 = shalt.err (!%p1627_p11)
}
  0x60   :  { %94 = dma.hbm_to_vmem [thread:$0]  %s2137_s12, 16, %s92_s22, [#allocation9]  }
  0x61   :  { %s1692_s21 = smov [#allocation11]   ;;  %s1631_s6 = scalar_lea.hbm %s2140_s15, 256 }
  0x62   :  { %s104_s24 = sshll.u32 %s1692_s21, 4  ;;  %p1632_p12 = scmp.ne.s32.totalorder %s2140_s15, %s1631_s6  ;;  %s105_s24 = int_to_ptr.vmem [resolvable:$true] %s104_s24 }
  0x63   :  { %p1635_p13 = scmp.lt.u32.totalorder %s1631_s6, %s2140_s15 }
  0x65   :  { %p1637_p0 = pnand %p1635_p13, %p1632_p12 }
  0x67   :  { %1640 = shalt.err (!%p1637_p0)
}
  0x68   :  { %s1641_s29 = scalar_lea.vmem %s105_s24, 256  ;;  %p1646_p2 = scmp.lt.s32.totalorder %s105_s24, %s105_s24 }
  0x69   :  { %p1642_p1 = scmp.ne.s32.totalorder %s105_s24, %s1641_s29  ;;  %p1647_p3 = scmp.lt.s32.totalorder %s1641_s29, %s1641_s29 }
  0x6b   :  { %p1648_p4 = por %p1647_p3, %p1646_p2 }
  0x6d   :  { %p1649_p5 = pnand %p1648_p4, %p1642_p1 }
  0x6f   :  { %1652 = shalt.err (!%p1649_p5)
}
  0x70   :  { %110 = dma.hbm_to_vmem [thread:$0]  %s2140_s15, 256, %s105_s24, [#allocation12], %s1688_s10, %s1688_s10, %s1689_s27  }
  0x71   :  { %1675 = dma.done.wait [#allocation3], 256  }
  0x72   :  { %1676 = vsyncadd [#allocation3], 4294967040 }
  0x73   :  { %1677 = dma.done.wait [#allocation6], 32  }
  0x74   :  { %1678 = vsyncadd [#allocation6], 4294967264 }
  0x75   :  { %1679 = dma.done.wait [#allocation9], 32  }
  0x76   :  { %1680 = vsyncadd [#allocation9], 4294967264 }
  0x77   :  { %1681 = dma.done.wait [#allocation12], 256  }
  0x78   :  { %1682 = vsyncadd [#allocation12], 4294967040  ;;  %vm144_vm0 = vcmask 261120   ;;  %s2148_s18 = sld [smem:[#allocation20_spill]]  ;;  %v1875_v5 = vld [vmem:[#allocation2] sm:$0xff]  ;;  %v1879_v7 = vld [vmem:[#allocation2 + $0x8] sm:$0xff] }
  0x79   :  { %1221 = vmatprep.mubr.msk.f32.mxu0 %vm144_vm0, %v1875_v5  ;;  %v1101_v8 = vld [vmem:[%s2127_s2] ss:$0 sm:$0xff]  ;;  %vm242_vm1 = vcmask 130048   ;;  %s1693_s26 = smov 96   ;;  %v227_v19 = vld [vmem:[%s2138_s13 + $0x8] sm:$0xff]  ;;  %v228_v20 = vld [vmem:[%s2138_s13 + $0x10] sm:$0xff] }
  0x7a   :  { %v226_v9 = vld [vmem:[%s2138_s13] sm:$0xff]  ;;  %v229_v21 = vld [vmem:[%s2138_s13 + $0x18] sm:$0xff]  ;;  %v231_v23 = vld [vmem:[%s2138_s13 + $0x28] sm:$0xff]  ;;  %vm505_vm3 = vcmask 523264  }
  0x7b   :  { %v230_v22 = vld [vmem:[%s2138_s13 + $0x20] sm:$0xff]  ;;  %v232_v24 = vld [vmem:[%s2138_s13 + $0x30] sm:$0xff]  ;;  %v233_v25 = vld [vmem:[%s2138_s13 + $0x38] sm:$0xff] }
  0x7c   :  { %v497_v26 = vld [vmem:[%s2141_s16] sm:$0xff]  ;;  %v498_v27 = vld [vmem:[%s2141_s16 + $0x8] sm:$0xff]  ;;  %v499_v28 = vld [vmem:[%s2141_s16 + $0x10] sm:$0xff] }
  0x7d   :  { %v1390_v29 = vpack.c.bf16 %v498_v27, %v497_v26  ;;  %v500_v30 = vld [vmem:[%s2141_s16 + $0x18] sm:$0xff]  ;;  %v501_v32 = vld [vmem:[%s2141_s16 + $0x20] sm:$0xff]  ;;  %v502_v33 = vld [vmem:[%s2141_s16 + $0x28] sm:$0xff] }
  0x7e   :  { %v133_v0 = vld [vmem:[%s2148_s18] sm:$0xff]  ;;  %v134_v1 = vld [vmem:[%s2148_s18 + $0x8] sm:$0xff]  ;;  %v135_v2 = vld [vmem:[%s2148_s18 + $0x10] sm:$0xff]  ;;  %v1394_v31 = vpack.c.bf16 %v500_v30, %v499_v28  ;;  %v1398_v34 = vpack.c.bf16 %v502_v33, %v501_v32 }
  0x7f   :  { %v1354_v3 = vpack.c.bf16 %v134_v1, %v133_v0  ;;  %v136_v4 = vld [vmem:[%s2148_s18 + $0x18] sm:$0xff]  ;;  %v503_v35 = vld [vmem:[%s2141_s16 + $0x30] sm:$0xff]  ;;  %v373_v38 = vld [vmem:[%s2139_s14 + $0x8] sm:$0xff]  ;;  %s1694_s18 = smov [#allocation13]  }
  0x80   :  { %v1358_v6 = vpack.c.bf16 %v136_v4, %v135_v2  ;;  %v504_v36 = vld [vmem:[%s2141_s16 + $0x38] sm:$0xff]  ;;  %v372_v39 = vld [vmem:[%s2139_s14] sm:$0xff]  ;;  %vm1958_vm2 = vmpackc.low %vm144_vm0, %vm144_vm0  ;;  %s1086_s8 = sshll.u32 %s1694_s18, 4  ;;  %s1087_s8 = int_to_ptr.vmem [resolvable:$true] %s1086_s8 }
  0x81   :  { %1355 = vmatprep.subr.bf16.mxu0 %v1354_v3  ;;  %v1402_v37 = vpack.c.bf16 %v504_v36, %v503_v35  ;;  %v375_v44 = vld [vmem:[%s2139_s14 + $0x18] sm:$0xff]  ;;  %v374_v46 = vld [vmem:[%s2139_s14 + $0x10] sm:$0xff]  ;;  %v377_v53 = vld [vmem:[%s2139_s14 + $0x28] sm:$0xff]  ;;  %s1653_s25 = scalar_lea.vmem %s1087_s8, 256  ;;  %p1658_p7 = scmp.lt.s32.totalorder %s1087_s8, %s1087_s8 }
  0x82   :  { %1357 = vmatpush3.bf16.msra.mxu0 %v1354_v3  ;;  %v376_v54 = vld [vmem:[%s2139_s14 + $0x20] sm:$0xff]  ;;  %v379_v61 = vld [vmem:[%s2139_s14 + $0x38] sm:$0xff]  ;;  %v378_v62 = vld [vmem:[%s2139_s14 + $0x30] sm:$0xff]  ;;  %p1654_p6 = scmp.ne.s32.totalorder %s1087_s8, %s1653_s25  ;;  %p1659_p8 = scmp.lt.s32.totalorder %s1653_s25, %s1653_s25 }
  0x83   :  { %1359 = vmatprep.subr.bf16.mxu0 %v1358_v6  ;;  %v702_v35 = vld [vmem:[%s2128_s3] sm:$0xff]  ;;  %v703_v36 = vld [vmem:[%s2128_s3 + $0x8] sm:$0xff] }
  0x84   :  { %p1660_p9 = por %p1659_p8, %p1658_p7 }
  0x86   :  { %1361 = vmatpush3.bf16.msra.mxu0 %v1358_v6  ;;  %p1661_p10 = pnand %p1660_p9, %p1654_p6 }
  0x89   :  { %1222 = vmatmul.mubr.msk.f32.vlgmr.msra.gmra.mrb[0].mxu0 %vm144_vm0, %v1879_v7 }
  0x8a   :  { %1228 = vmatprep.mubr.msk.f32.mxu0 %vm242_vm1, %v226_v9 }
 0x15c   :  { %v1223_v10 = vpop.f32.mrb[0].mxu0 }
 0x15d   :  { %v1890_v11 = vadd.f32 %v1223_v10, %v1101_v8  ;;  %v217_v12 = vpop.f32.mrb[1].mxu0 }
 0x15e   :  { %v218_v13 = vadd.f32 %v1101_v8, %v217_v12 }
 0x160   :  { %1256 = vmatprep.mubr.msk.f32.mxu1 %vm144_vm0, %v218_v13  ;;  %v1480_v14 = vpack.i.bf16 %v1890_v11, %v218_v13 }
 0x162   :  { %1481 = vrot.lane.b32.xlu0 %v1480_v14, %s1693_s26  ;;  %v389_v14 = vld [vmem:[#allocation11 + $0x8] sm:$0xff] }
 0x1d4   :  { %v1482_v15 = vpop.permute.xlu0 %1481 }
 0x1d5   :  { %v1484_v16 = vunpack.i.h.bf16 %v1482_v15  ;;  %v1483_v17 = vunpack.i.l.bf16 %v1482_v15  ;;  %v388_v15 = vld [vmem:[#allocation11] sm:$0xff] }
 0x1d7   :  { %v1362_v18 = vpack.c.bf16 %v1484_v16, %v1483_v17 }
 0x1d9   :  { %1363 = vmatprep.subr.bf16.mxu0 %v1362_v18 }
 0x1da   :  { %1365 = vmatpush3.bf16.msra.mxu0 %v1362_v18 }
 0x1db   :  { %1391 = vmatprep.subr.bf16.mxu0 %v1390_v29 }
 0x1dd   :  { %1229 = vmatmul.mubr.msk.f32.vlgmr.msra.gmra.mrb[2].mxu0 %vm242_vm1, %v227_v19 }
 0x1de   :  { %1231 = vmatprep.mubr.msk.f32.mxu0 %vm242_vm1, %v228_v20  ;;  %1393 = vmatpush3.bf16.msra.mxu0 %v1390_v29 }
 0x1df   :  { %1395 = vmatprep.subr.bf16.mxu0 %v1394_v31 }
 0x1e1   :  { %1232 = vmatmul.mubr.msk.f32.gmra.mrb[4].mxu0 %vm242_vm1, %v229_v21 }
 0x1e2   :  { %1234 = vmatprep.mubr.msk.f32.mxu0 %vm242_vm1, %v230_v22  ;;  %1397 = vmatpush3.bf16.msra.mxu0 %v1394_v31 }
 0x1e3   :  { %1399 = vmatprep.subr.bf16.mxu0 %v1398_v34 }
 0x1e5   :  { %1235 = vmatmul.mubr.msk.f32.gmra.mrb[6].mxu0 %vm242_vm1, %v231_v23 }
 0x1e6   :  { %1237 = vmatprep.mubr.msk.f32.mxu0 %vm242_vm1, %v232_v24  ;;  %1401 = vmatpush3.bf16.msra.mxu0 %v1398_v34 }
 0x1e7   :  { %1403 = vmatprep.subr.bf16.mxu0 %v1402_v37 }
 0x1e9   :  { %1238 = vmatmul.mubr.msk.f32.gmra.mrb[8].mxu0 %vm242_vm1, %v233_v25 }
 0x1ea   :  { %1405 = vmatpush3.bf16.msra.mxu0 %v1402_v37  ;;  %v1422_v37 = vpack.c.bf16 %v703_v36, %v702_v35  ;;  %v948_v35 = vld [vmem:[%s2134_s9 + $0x68] sm:$0xff] }
 0x2b0   :  { %v1230_v40 = vpop.f32.mrb[2].mxu0 }
 0x2b1   :  { %v381_v41 = vmul.f32 %v1230_v40, %v373_v38  ;;  %v333_v42 = vpop.f32.mrb[3].mxu0 }
 0x2b2   :  { %v380_v43 = vmul.f32 %v372_v39, %v333_v42 }
 0x2b4   :  { %v1485_v47 = vpack.i.bf16 %v381_v41, %v380_v43  ;;  %v1366_v48 = vpack.c.bf16 %v381_v41, %v380_v43  ;;  %v1233_v49 = vpop.f32.mrb[4].mxu0 }
 0x2b5   :  { %v383_v50 = vmul.f32 %v1233_v49, %v375_v44  ;;  %v343_v51 = vpop.f32.mrb[5].mxu0  ;;  %v705_v49 = vld [vmem:[%s2128_s3 + $0x18] sm:$0xff] }
 0x2b6   :  { %1486 = vrot.lane.b32.xlu0 %v1485_v47, %s1693_s26  ;;  %1368 = vmatprep.subr.msk.bf16.mxu1 %vm1958_vm2, %v1366_v48  ;;  %v382_v52 = vmul.f32 %v374_v46, %v343_v51 }
 0x2b7   :  { %1371 = vmatpush3.bf16.xpose.msk.msra.mxu1 %vm1958_vm2, %v1366_v48  ;;  %v704_v48 = vld [vmem:[%s2128_s3 + $0x10] sm:$0xff] }
 0x2b8   :  { %v1372_v55 = vpack.c.bf16 %v383_v50, %v382_v52  ;;  %v1490_v56 = vpack.i.bf16 %v383_v50, %v382_v52  ;;  %v1236_v57 = vpop.f32.mrb[6].mxu0  ;;  %v1426_v52 = vpack.c.bf16 %v705_v49, %v704_v48  ;;  %v1130_v48 = vld [vmem:[#allocation5] ss:$0 sm:$0xff] }
 0x2b9   :  { %v385_v58 = vmul.f32 %v1236_v57, %v377_v53  ;;  %v353_v59 = vpop.f32.mrb[7].mxu0 }
 0x2ba   :  { %1491 = vrot.lane.b32.xlu1 %v1490_v56, %s1693_s26  ;;  %1374 = vmatprep.subr.msk.bf16.mxu1 %vm1958_vm2, %v1372_v55  ;;  %v384_v60 = vmul.f32 %v376_v54, %v353_v59 }
 0x2bc   :  { %v1495_v63 = vpack.i.bf16 %v385_v58, %v384_v60  ;;  %v1378_v0 = vpack.c.bf16 %v385_v58, %v384_v60  ;;  %v1239_v1 = vpop.f32.mrb[8].mxu0 }
 0x2bd   :  { %v387_v2 = vmul.f32 %v1239_v1, %v379_v61  ;;  %v363_v3 = vpop.f32.mrb[9].mxu0 }
 0x2be   :  { %1496 = vrot.lane.b32.xlu1 %v1495_v63, %s1693_s26  ;;  %v386_v4 = vmul.f32 %v378_v62, %v363_v3 }
 0x2bf   :  { %1377 = vmatpush3.bf16.xpose.msk.msra.mxu1 %vm1958_vm2, %v1372_v55  ;;  %v1126_v55 = vld [vmem:[%s2129_s4] ss:$0 sm:$0xff] }
 0x2c0   :  { %1380 = vmatprep.subr.msk.bf16.mxu1 %vm1958_vm2, %v1378_v0  ;;  %v1500_v6 = vpack.i.bf16 %v387_v2, %v386_v4  ;;  %v1384_v8 = vpack.c.bf16 %v387_v2, %v386_v4 }
 0x2c2   :  { %1501 = vrot.lane.b32.xlu0 %v1500_v6, %s1693_s26 }
 0x2c7   :  { %1383 = vmatpush3.bf16.xpose.msk.msra.mxu1 %vm1958_vm2, %v1378_v0 }
 0x2c8   :  { %1386 = vmatprep.subr.msk.bf16.mxu1 %vm1958_vm2, %v1384_v8 }
 0x2cf   :  { %1389 = vmatpush3.bf16.xpose.msk.msra.mxu1 %vm1958_vm2, %v1384_v8 }
 0x2d6   :  { %1257 = vmatmul.mubr.msk.f32.vlgmr.msra.gmra.mrb[0].mxu1 %vm144_vm0, %v1890_v11 }
 0x328   :  { %v1487_v9 = vpop.permute.xlu0 %1486 }
 0x329   :  { %v1489_v10 = vunpack.i.h.bf16 %v1487_v9  ;;  %v1488_v12 = vunpack.i.l.bf16 %v1487_v9 }
 0x32b   :  { %v1406_v13 = vpack.c.bf16 %v1489_v10, %v1488_v12  ;;  %v841_v10 = vld [vmem:[%s2132_s7] sm:$0xff]  ;;  %v842_v12 = vld [vmem:[%s2132_s7 + $0x8] sm:$0xff] }
 0x32c   :  { %v1492_v22 = vpop.permute.xlu1 %1491 }
 0x32d   :  { %1407 = vmatprep.subr.bf16.mxu0 %v1406_v13  ;;  %v1494_v23 = vunpack.i.h.bf16 %v1492_v22  ;;  %v1493_v24 = vunpack.i.l.bf16 %v1492_v22 }
 0x32f   :  { %v1410_v27 = vpack.c.bf16 %v1494_v23, %v1493_v24  ;;  %v939_v23 = vld [vmem:[%s2134_s9 + $0x20] sm:$0xff]  ;;  %v940_v24 = vld [vmem:[%s2134_s9 + $0x28] sm:$0xff] }
 0x330   :  { %v1497_v11 = vpop.permute.xlu1 %1496 }
 0x331   :  { %v1499_v28 = vunpack.i.h.bf16 %v1497_v11  ;;  %v1498_v29 = vunpack.i.l.bf16 %v1497_v11  ;;  %v1446_v11 = vpack.c.bf16 %v940_v24, %v939_v23 }
 0x333   :  { %v1414_v31 = vpack.c.bf16 %v1499_v28, %v1498_v29  ;;  %v943_v28 = vld [vmem:[%s2134_s9 + $0x40] sm:$0xff]  ;;  %v944_v29 = vld [vmem:[%s2134_s9 + $0x48] sm:$0xff] }
 0x334   :  { %v1502_v30 = vpop.permute.xlu0 %1501 }
 0x335   :  { %v1504_v32 = vunpack.i.h.bf16 %v1502_v30  ;;  %v1503_v33 = vunpack.i.l.bf16 %v1502_v30  ;;  %v1454_v30 = vpack.c.bf16 %v944_v29, %v943_v28  ;;  %v1136_v29 = vld [vmem:[#allocation10] ss:$0 sm:$0xff] }
 0x337   :  { %v1418_v34 = vpack.c.bf16 %v1504_v32, %v1503_v33  ;;  %v946_v32 = vld [vmem:[%s2134_s9 + $0x58] sm:$0xff] }
 0x3a9   :  { %v1258_v16 = vpop.f32.mrb[0].mxu1 }
 0x3aa   :  { %v490_v17 = vadd.f32 %v1258_v16, %v389_v14  ;;  %v484_v18 = vpop.f32.mrb[1].mxu1  ;;  %v843_v14 = vld [vmem:[%s2132_s7 + $0x10] sm:$0xff] }
 0x3ab   :  { %v485_v19 = vadd.f32 %v484_v18, %v388_v15  ;;  %v844_v15 = vld [vmem:[%s2132_s7 + $0x18] sm:$0xff]  ;;  %v936_v18 = vld [vmem:[%s2134_s9 + $0x8] sm:$0xff] }
 0x3ac   :  { %v495_v20 = vmul.f32 1.442695, %v490_v17  ;;  %v1434_v16 = vpack.c.bf16 %v844_v15, %v843_v14  ;;  %v935_v17 = vld [vmem:[%s2134_s9] sm:$0xff] }
 0x3ad   :  { %v493_v21 = vmul.f32 1.442695, %v485_v19  ;;  %v937_v19 = vld [vmem:[%s2134_s9 + $0x10] sm:$0xff] }
 0x3af   :  { %1505 = vpow2.f32 %v493_v21  ;;  %v938_v21 = vld [vmem:[%s2134_s9 + $0x18] sm:$0xff] }
 0x3b0   :  { %1507 = vpow2.f32 %v495_v20  ;;  %v1438_v20 = vpack.c.bf16 %v936_v18, %v935_v17  ;;  %v1442_v22 = vpack.c.bf16 %v938_v21, %v937_v19 }
 0x3b2   :  { %1439 = vmatprep.subr.bf16.mxu1 %v1438_v20 }
 0x3b3   :  { %1441 = vmatpush3.bf16.msra.mxu1 %v1438_v20 }
 0x3b4   :  { %1443 = vmatprep.subr.bf16.mxu1 %v1442_v22 }
 0x3b7   :  { %1445 = vmatpush3.bf16.msra.mxu1 %v1442_v22 }
 0x3b8   :  { %1447 = vmatprep.subr.bf16.mxu1 %v1446_v11 }
 0x3b9   :  { %v1506_v25 = vpop.eup %1505 }
 0x3ba   :  { %v1508_v26 = vpop.eup %1507  ;;  %1275 = vmatprep.mubr.msk.f32.mxu0 %vm505_vm3, %v1506_v25 }
 0x3bb   :  { %1276 = vmatmul.mubr.msk.f32.vlgmr.msra.gmra.mrb[10].mxu0 %vm505_vm3, %v1508_v26  ;;  %1449 = vmatpush3.bf16.msra.mxu1 %v1446_v11 }
 0x3bc   :  { %1409 = vmatpush3.bf16.msra.mxu0 %v1406_v13  ;;  %v1430_v13 = vpack.c.bf16 %v842_v12, %v841_v10 }
 0x3bd   :  { %1411 = vmatprep.subr.bf16.mxu0 %v1410_v27 }
 0x3c0   :  { %1413 = vmatpush3.bf16.msra.mxu0 %v1410_v27 }
 0x3c1   :  { %1415 = vmatprep.subr.bf16.mxu0 %v1414_v31 }
 0x3c4   :  { %1417 = vmatpush3.bf16.msra.mxu0 %v1414_v31  ;;  %v945_v31 = vld [vmem:[%s2134_s9 + $0x50] sm:$0xff] }
 0x3c5   :  { %1419 = vmatprep.subr.bf16.mxu0 %v1418_v34  ;;  %v1458_v33 = vpack.c.bf16 %v946_v32, %v945_v31 }
 0x3c8   :  { %1421 = vmatpush3.bf16.msra.mxu0 %v1418_v34  ;;  %v947_v34 = vld [vmem:[%s2134_s9 + $0x60] sm:$0xff] }
 0x3c9   :  { %1423 = vmatprep.subr.bf16.mxu0 %v1422_v37  ;;  %v1462_v36 = vpack.c.bf16 %v948_v35, %v947_v34 }
 0x48e   :  { %v1277_v38 = vpop.f32.mrb[10].mxu0 }
 0x48f   :  { %1509 = vrcp.f32 %v1277_v38  ;;  %v578_v39 = vpop.f32.mrb[11].mxu0 }
 0x490   :  { %1511 = vrcp.f32 %v578_v39 }
 0x499   :  { %v1510_v40 = vpop.eup %1509 }
 0x49a   :  { %v1512_v41 = vpop.eup %1511  ;;  %v590_v42 = vmul.f32 %v1510_v40, %v1277_v38 }
 0x49b   :  { %v589_v43 = vmul.f32 %v1512_v41, %v578_v39 }
 0x49c   :  { %v592_v44 = vsub.f32 2.0, %v590_v42 }
 0x49d   :  { %v591_v45 = vsub.f32 2.0, %v589_v43 }
 0x49e   :  { %v594_v46 = vmul.f32 %v1510_v40, %v592_v44  ;;  %v1129_v44 = vld [vmem:[%s2130_s5] ss:$0 sm:$0xff] }
 0x49f   :  { %v593_v47 = vmul.f32 %v1512_v41, %v591_v45 }
 0x4a0   :  { %v596_v51 = vmul.f32 %v1508_v26, %v594_v46  ;;  %v942_v26 = vld [vmem:[%s2134_s9 + $0x38] sm:$0xff] }
 0x4a1   :  { %v595_v50 = vmul.f32 %v1506_v25, %v593_v47  ;;  %v941_v25 = vld [vmem:[%s2134_s9 + $0x30] sm:$0xff] }
 0x4a2   :  { %v1450_v27 = vpack.c.bf16 %v942_v26, %v941_v25  ;;  %v1135_v25 = vld [vmem:[%s2136_s11] ss:$0 sm:$0xff] }
 0x4a3   :  { %1294 = vmatprep.mubr.msk.f32.mxu0 %vm505_vm3, %v595_v50 }
 0x4a4   :  { %1295 = vmatmul.mubr.msk.f32.vlgmr.msra.gmra.mrb[12].mxu0 %vm505_vm3, %v596_v51  ;;  %1451 = vmatprep.subr.bf16.mxu1 %v1450_v27 }
 0x4a5   :  { %1425 = vmatpush3.bf16.msra.mxu0 %v1422_v37  ;;  %1453 = vmatpush3.bf16.msra.mxu1 %v1450_v27 }
 0x4a6   :  { %1427 = vmatprep.subr.bf16.mxu0 %v1426_v52  ;;  %1455 = vmatprep.subr.bf16.mxu1 %v1454_v30 }
 0x4a9   :  { %1429 = vmatpush3.bf16.msra.mxu0 %v1426_v52  ;;  %1457 = vmatpush3.bf16.msra.mxu1 %v1454_v30 }
 0x4aa   :  { %1431 = vmatprep.subr.bf16.mxu0 %v1430_v13  ;;  %1459 = vmatprep.subr.bf16.mxu1 %v1458_v33 }
 0x4ad   :  { %1461 = vmatpush3.bf16.msra.mxu1 %v1458_v33 }
 0x4ae   :  { %1463 = vmatprep.subr.bf16.mxu1 %v1462_v36 }
 0x4b1   :  { %1465 = vmatpush3.bf16.msra.mxu1 %v1462_v36 }
 0x577   :  { %v1296_v53 = vpop.f32.mrb[12].mxu0 }
 0x578   :  { %v693_v54 = vpop.f32.mrb[13].mxu0 }
 0x579   :  { %1305 = vmatprep.mubr.msk.f32.mxu0 %vm144_vm0, %v693_v54  ;;  %v950_v54 = vld [vmem:[%s2134_s9 + $0x78] sm:$0xff] }
 0x57a   :  { %1306 = vmatmul.mubr.msk.f32.vlgmr.msra.gmra.mrb[14].mxu0 %vm144_vm0, %v1296_v53  ;;  %v949_v53 = vld [vmem:[%s2134_s9 + $0x70] sm:$0xff] }
 0x57b   :  { %1433 = vmatpush3.bf16.msra.mxu0 %v1430_v13 }
 0x57c   :  { %1435 = vmatprep.subr.bf16.mxu0 %v1434_v16 }
 0x57f   :  { %1437 = vmatpush3.bf16.msra.mxu0 %v1434_v16 }
 0x64d   :  { %v1307_v56 = vpop.f32.mrb[14].mxu0 }
 0x64e   :  { %v791_v57 = vadd.f32 %v1307_v56, %v1126_v55  ;;  %v785_v58 = vpop.f32.mrb[15].mxu0  ;;  %v1131_v56 = vld [vmem:[#allocation7] ss:$0 sm:$0xff] }
 0x64f   :  { %v786_v59 = vadd.f32 %v1126_v55, %v785_v58  ;;  %v1466_v55 = vpack.c.bf16 %v950_v54, %v949_v53 }
 0x650   :  { %v795_v60 = vadd.f32 %v791_v57, %v1879_v7 }
 0x651   :  { %v794_v61 = vadd.f32 %v786_v59, %v1875_v5  ;;  %1467 = vmatprep.subr.bf16.mxu1 %v1466_v55 }
 0x652   :  { %v801_v62 = vsel %vm144_vm0, %v795_v60, 0.0  ;;  %1469 = vmatpush3.bf16.msra.mxu1 %v1466_v55 }
 0x653   :  { %802 = vadd.xlane.f32.xlu0 %v801_v62  ;;  %v798_v63 = vsel %vm144_vm0, %v794_v61, 0.0 }
 0x654   :  { %799 = vadd.xlane.f32.xlu1 %v798_v63  ;;  %v1134_v63 = vld [vmem:[#allocation8] ss:$0 sm:$0xff] }
 0x6e0   :  { %v803_v0 = vpop.xlane.xlu0 %802 }
 0x6e1   :  { %v806_v1 = vmul.f32 0.03125, %v803_v0  ;;  %v800_v2 = vpop.xlane.xlu1 %799 }
 0x6e2   :  { %v805_v3 = vmul.f32 0.03125, %v800_v2 }
 0x6e3   :  { %v2024_v4 = vsub.f32 %v795_v60, %v806_v1 }
 0x6e4   :  { %v2026_v6 = vsub.f32 %v794_v61, %v805_v3 }
 0x6e5   :  { %v810_v8 = vmul.f32 %v2024_v4, %v2024_v4 }
 0x6e6   :  { %v809_v5 = vmul.f32 %v2026_v6, %v2026_v6 }
 0x6e7   :  { %v814_v7 = vsel %vm144_vm0, %v810_v8, 0.0 }
 0x6e8   :  { %815 = vadd.xlane.f32.xlu1 %v814_v7  ;;  %v811_v9 = vsel %vm144_vm0, %v809_v5, 0.0 }
 0x6e9   :  { %812 = vadd.xlane.f32.xlu0 %v811_v9 }
 0x775   :  { %v816_v37 = vpop.xlane.xlu1 %815 }
 0x776   :  { %v818_v38 = vmul.f32 0.03125, %v816_v37  ;;  %v813_v39 = vpop.xlane.xlu0 %812 }
 0x777   :  { %v817_v40 = vmul.f32 0.03125, %v813_v39 }
 0x778   :  { %v820_v41 = vadd.f32 1e-05, %v818_v38 }
 0x779   :  { %v819_v42 = vadd.f32 1e-05, %v817_v40 }
 0x77a   :  { %1513 = vrsqrt.f32 %v820_v41 }
 0x77b   :  { %1515 = vrsqrt.f32 %v819_v42 }
 0x784   :  { %v1514_v43 = vpop.eup %1513 }
 0x785   :  { %v1516_v45 = vpop.eup %1515  ;;  %v824_v46 = vmul.f32 %v1514_v43, %v2024_v4 }
 0x786   :  { %v823_v47 = vmul.f32 %v1516_v45, %v2026_v6 }
 0x787   :  { %v832_v49 = vmul.f32 %v1129_v44, %v824_v46 }
 0x788   :  { %v831_v50 = vmul.f32 %v1129_v44, %v823_v47 }
 0x789   :  { %v840_v52 = vadd.f32 %v1130_v48, %v832_v49 }
 0x78a   :  { %v839_v51 = vadd.f32 %v1130_v48, %v831_v50 }
 0x78c   :  { %1316 = vmatprep.mubr.msk.f32.mxu0 %vm144_vm0, %v839_v51 }
 0x78d   :  { %1317 = vmatmul.mubr.msk.f32.vlgmr.msra.gmra.mrb[16].mxu0 %vm144_vm0, %v840_v52 }
 0x860   :  { %v1318_v57 = vpop.f32.mrb[16].mxu0 }
 0x861   :  { %v930_v58 = vadd.f32 %v1318_v57, %v1131_v56  ;;  %v924_v59 = vpop.f32.mrb[17].mxu0 }
 0x862   :  { %v925_v60 = vadd.f32 %v1131_v56, %v924_v59 }
 0x863   :  { %v934_v62 = vmax.f32 %v930_v58, 0.0 }
 0x864   :  { %v933_v61 = vmax.f32 %v925_v60, 0.0 }
 0x866   :  { %1351 = vmatprep.mubr.f32.mxu1 %v933_v61 }
 0x867   :  { %1352 = vmatmul.mubr.f32.vlgmr.msra.gmra.mrb[2].mxu1 %v934_v62 }
 0x93a   :  { %v1353_v0 = vpop.f32.mrb[2].mxu1 }
 0x93b   :  { %v1030_v1 = vadd.f32 %v1353_v0, %v1134_v63  ;;  %v1024_v2 = vpop.f32.mrb[3].mxu1 }
 0x93c   :  { %v1025_v3 = vadd.f32 %v1134_v63, %v1024_v2 }
 0x93d   :  { %v1034_v4 = vadd.f32 %v1030_v1, %v840_v52 }
 0x93e   :  { %v1033_v6 = vadd.f32 %v1025_v3, %v839_v51 }
 0x93f   :  { %v1040_v8 = vsel %vm144_vm0, %v1034_v4, 0.0 }
 0x940   :  { %1041 = vadd.xlane.f32.xlu1 %v1040_v8  ;;  %v1037_v5 = vsel %vm144_vm0, %v1033_v6, 0.0 }
 0x941   :  { %1038 = vadd.xlane.f32.xlu0 %v1037_v5 }
 0x9cd   :  { %v1042_v7 = vpop.xlane.xlu1 %1041 }
 0x9ce   :  { %v1044_v9 = vmul.f32 0.03125, %v1042_v7  ;;  %v1039_v10 = vpop.xlane.xlu0 %1038 }
 0x9cf   :  { %v1043_v12 = vmul.f32 0.03125, %v1039_v10 }
 0x9d0   :  { %v1046_v13 = vsub.f32 %v1034_v4, %v1044_v9 }
 0x9d1   :  { %v1045_v14 = vsub.f32 %v1033_v6, %v1043_v12 }
 0x9d2   :  { %v1048_v15 = vmul.f32 %v1046_v13, %v1046_v13 }
 0x9d3   :  { %v1047_v16 = vmul.f32 %v1045_v14, %v1045_v14 }
 0x9d4   :  { %v1052_v17 = vsel %vm144_vm0, %v1048_v15, 0.0 }
 0x9d5   :  { %1053 = vadd.xlane.f32.xlu1 %v1052_v17  ;;  %v1049_v18 = vsel %vm144_vm0, %v1047_v16, 0.0 }
 0x9d6   :  { %1050 = vadd.xlane.f32.xlu0 %v1049_v18 }
 0xa62   :  { %v1054_v19 = vpop.xlane.xlu1 %1053 }
 0xa63   :  { %v1056_v20 = vmul.f32 0.03125, %v1054_v19  ;;  %v1051_v21 = vpop.xlane.xlu0 %1050 }
 0xa64   :  { %v1055_v22 = vmul.f32 0.03125, %v1051_v21 }
 0xa65   :  { %v1058_v23 = vadd.f32 1e-05, %v1056_v20 }
 0xa66   :  { %v1057_v24 = vadd.f32 1e-05, %v1055_v22 }
 0xa67   :  { %1517 = vrsqrt.f32 %v1058_v23 }
 0xa68   :  { %1519 = vrsqrt.f32 %v1057_v24 }
 0xa71   :  { %v1518_v11 = vpop.eup %1517 }
 0xa72   :  { %v1520_v26 = vpop.eup %1519  ;;  %v1062_v27 = vmul.f32 %v1518_v11, %v1046_v13 }
 0xa73   :  { %v1061_v28 = vmul.f32 %v1520_v26, %v1045_v14 }
 0xa74   :  { %v1070_v30 = vmul.f32 %v1135_v25, %v1062_v27 }
 0xa75   :  { %v1069_v31 = vmul.f32 %v1135_v25, %v1061_v28 }
 0xa76   :  { %v1078_v32 = vadd.f32 %v1136_v29, %v1070_v30 }
 0xa77   :  { %v1077_v33 = vadd.f32 %v1136_v29, %v1069_v31 }
 0xa78   :  { %1080 = vst.msk [vmem:[#allocation13 + $0x8] sm:$0xff] %vm144_vm0, %v1078_v32 }
 0xa79   :  { %1079 = vst.msk [vmem:[#allocation13] sm:$0xff] %vm144_vm0, %v1077_v33 }
 0xa7a   :  { %1664 = shalt.err (!%p1661_p10)
}
 0xa7b   :  { %s1665_s19 = scalar_lea.hbm %s2142_s17, 256 }
 0xa7c   :  { %p1666_p11 = scmp.ne.s32.totalorder %s2142_s17, %s1665_s19  ;;  %p1669_p12 = scmp.lt.u32.totalorder %s1665_s19, %s2142_s17 }
 0xa7e   :  { %p1671_p13 = pnand %p1669_p12, %p1666_p11 }
 0xa80   :  { %1674 = shalt.err (!%p1671_p13)
}
 0xa81   :  { %1092 = dma.vmem_to_hbm [thread:$0]  %s1087_s8, 256, %s2142_s17, [#allocation4], %s1688_s10, %s1688_s10, %s1689_s27  }
 0xa82   :  { %1683 = dma.done.wait [#allocation4], 256  }
 0xa83   :  { %1684 = vsyncadd [#allocation4], 4294967040 }
 0xa84   :  { %1096 = vsyncpa [#allocation3], 1 }
 0xa85   :  { %1097 = vsyncpa [#allocation6], 1 }
 0xa86   :  { %1098 = vsyncpa [#allocation9], 1 }
 0xa87   :  { %1099 = vsyncpa [#allocation12], 1 }
 0xa88   :  { %1100 = vsyncpa [#allocation4], 1 }

</bundles_post_ra>
